<compile_context>
chip_gen: v5e
topology: v5e:2x2
jax: 0.10.0
libtpu: 0.0.40
codegen_flags: <defaults>
</compile_context>

<pallas_src>
import functools

import jax
import jax.numpy as jnp
from jax.experimental import pallas as pl
from jax.experimental.pallas import tpu as pltpu


# --------------------------------------------------------------------------
# Kernel: streaming per-column moments  (sum(x-c), sum((x-c)^2)).
# --------------------------------------------------------------------------
def _col_moments_kernel(s_ref, out_ref, acc_sum, acc_sq, shift_ref, *,
                        tile_n, slab, n_rows, use_shift):
    i = pl.program_id(1)            # row-tile index (reduction, "arbitrary")
    nn = pl.num_programs(1)

    @pl.when(i == 0)
    def _init():
        acc_sum[...] = jnp.zeros_like(acc_sum)
        acc_sq[...] = jnp.zeros_like(acc_sq)
        if use_shift:
            # Per-column shift from the first (always valid) row: makes the
            # single-pass variance robust to |mean| >> std.
            shift_ref[...] = s_ref[pl.ds(0, 1), :].astype(jnp.float32)

    def _accumulate(mask_rows):
        n_slabs = tile_n // slab

        def body(j, carry):
            r0 = j * slab
            s = s_ref[pl.ds(r0, slab), :].astype(jnp.float32)
            if use_shift:
                s = s - shift_ref[...]
            if mask_rows:
                row = (i * tile_n + r0
                       + jax.lax.broadcasted_iota(jnp.int32, s.shape, 0))
                s = jnp.where(row < n_rows, s, 0.0)
            if slab % 8 == 0:
                # Pure elementwise VALU adds onto the (8, tile_d) slabs.
                s3 = s.reshape(slab // 8, 8, s.shape[-1])
                acc_sum[...] += jnp.sum(s3, axis=0)
                acc_sq[...] += jnp.sum(s3 * s3, axis=0)
            else:
                # Tiny-tile fallback (fewer than 8 rows in total).
                acc_sum[pl.ds(0, 1), :] += jnp.sum(s, axis=0, keepdims=True)
                acc_sq[pl.ds(0, 1), :] += jnp.sum(s * s, axis=0, keepdims=True)
            return carry

        jax.lax.fori_loop(0, n_slabs, body, 0, unroll=True)

    # Hot path: full tiles, no row mask.
    @pl.when(i < nn - 1)
    def _bulk():
        _accumulate(mask_rows=False)

    # Last tile: mask the ragged rows (only if the shape is actually ragged),
    # then fold the 8 sublanes and emit the per-column moments.
    @pl.when(i == nn - 1)
    def _last():
        _accumulate(mask_rows=(n_rows % tile_n != 0))
        out_ref[pl.ds(0, 1), :] = jnp.sum(acc_sum[...], axis=0, keepdims=True)
        out_ref[pl.ds(1, 1), :] = jnp.sum(acc_sq[...], axis=0, keepdims=True)


# --------------------------------------------------------------------------
# Tiling helpers.
# --------------------------------------------------------------------------
def _round_up(x, m):
    return ((x + m - 1) // m) * m


def _largest_divisor_at_most(n, cap):
    cap = max(1, min(cap, n))
    for r in range(cap, 0, -1):
        if n % r == 0:
            return r
    return 1


def _vmem_budget():
    """(per-input-buffer byte target, scoped-VMEM limit), generation aware."""
    vmem_cap = 64 << 20  # conservative default (v7x-sized)
    try:
        info = pltpu.get_tpu_info()
        cap = getattr(info, "vmem_capacity_bytes", None)
        if cap:
            vmem_cap = int(cap)
    except Exception:
        pass
    if vmem_cap >= (100 << 20):        # v5e / v6e: 128 MiB physical VMEM
        return 12 << 20, 64 << 20
    return 6 << 20, 40 << 20           # v7x: 64 MiB per TensorCore


# --------------------------------------------------------------------------
# Wrapper.
# --------------------------------------------------------------------------
def div_loss(scores: jax.Array) -> jax.Array:
    """scores: [N, D] (any float dtype). Returns scalar f32 loss."""
    assert scores.ndim == 2, "expected 2-D scores [N, D]"
    n, d = scores.shape
    itemsize = jnp.dtype(scores.dtype).itemsize

    # ---- Narrow-D lane packing (free, layout-preserving reshape) ----------
    r = 1
    if d < 128:
        r = _largest_divisor_at_most(n, 128 // d)
    x = scores.reshape(n // r, r * d) if r > 1 else scores
    nrows, ncols = x.shape
    use_shift = (r == 1)   # per-lane shifts would break the cross-lane fold

    # ---- Column (lane) tiling ---------------------------------------------
    if ncols >= 256:
        # >=2 column blocks so the "parallel" axis can feed both v7x cores;
        # a ragged last block is fine (its columns fall outside the output).
        tile_d = min(512, _round_up(pl.cdiv(ncols, 2), 128))
    else:
        tile_d = ncols
    nd = pl.cdiv(ncols, tile_d)

    # ---- Row tiling (generation-aware VMEM budget) -------------------------
    target_buf_bytes, vmem_limit = _vmem_budget()
    budget_rows = max(8, (target_buf_bytes // max(tile_d * itemsize, 1)) // 8 * 8)
    if nrows >= 8:
        rows_cap = (nrows // 8) * 8          # every block starts in-bounds
        tile_n = min(budget_rows, rows_cap)
        slab = _round_up(pl.cdiv(tile_n, 8), 8)   # <= 8 unrolled slabs / tile
        tile_n = max(slab, (tile_n // slab) * slab)
    else:
        tile_n = nrows
        slab = nrows
    nn = pl.cdiv(nrows, tile_n)

    kernel = functools.partial(_col_moments_kernel, tile_n=tile_n, slab=slab,
                               n_rows=nrows, use_shift=use_shift)

    moments = pl.pallas_call(
        kernel,
        out_shape=jax.ShapeDtypeStruct((2, ncols), jnp.float32),
        grid_spec=pltpu.PrefetchScalarGridSpec(
            num_scalar_prefetch=0,
            grid=(nd, nn),
            in_specs=[pl.BlockSpec((tile_n, tile_d), lambda db, i: (i, db))],
            out_specs=pl.BlockSpec((2, tile_d), lambda db, i: (0, db)),
            scratch_shapes=[pltpu.VMEM((8, tile_d), jnp.float32),   # acc_sum
                            pltpu.VMEM((8, tile_d), jnp.float32),   # acc_sq
                            pltpu.VMEM((1, tile_d), jnp.float32)],  # shift
        ),
        compiler_params=pltpu.CompilerParams(
            dimension_semantics=("parallel", "arbitrary"),
            vmem_limit_bytes=int(vmem_limit),
        ),
        cost_estimate=pl.CostEstimate(
            flops=5 * n * d,
            transcendentals=0,
            bytes_accessed=n * d * itemsize + 2 * ncols * 4,
        ),
    )(x)

    # ---- Tiny XLA epilogue on D scalars ------------------------------------
    col_sum = moments[0]
    col_sq = moments[1]
    if r > 1:
        col_sum = col_sum.reshape(r, d).sum(axis=0)
        col_sq = col_sq.reshape(r, d).sum(axis=0)
    inv_n = jnp.float32(1.0 / n)
    m = col_sum * inv_n                     # mean of (x - shift): shift cancels
    var = col_sq * inv_n - m * m            # biased variance, as in PyTorch
    std = jnp.sqrt(jnp.maximum(var, jnp.float32(1e-12)))
    return -jnp.sum(std)


def div_loss_ref(scores: jax.Array) -> jax.Array:
    s = scores.astype(jnp.float32)
    mu = s.mean(0)
    var = ((s - mu) ** 2).mean(0, keepdims=True)
    std = jnp.sqrt(jnp.maximum(var, 1e-12))
    return -std.sum()


if __name__ == "__main__":
    key = jax.random.PRNGKey(0)
    k1, k2, k3 = jax.random.split(key, 3)

    # IDM's DivLoss consumes domain-attention scores: [batch, num_domains].
    cases = [
        jax.random.uniform(k1, (8, 4), dtype=jnp.float32),    # module-typical tiny case
        jax.random.uniform(k2, (64, 4), dtype=jnp.float32),   # lane-packed path, dense 128 lanes
        5.0 + 3.0 * jax.random.normal(k3, (37, 130), dtype=jnp.float32),  # general path, ragged rows + shift
    ]

    for s in cases:
        out = jax.block_until_ready(div_loss(s))
        ref = jax.block_until_ready(div_loss_ref(s))
        assert jnp.allclose(out, ref, rtol=1e-4, atol=1e-5), (s.shape, out, ref)

    print("KERNEL_OK")
</pallas_src>

<mosaic_0001>
module attributes {stable_mosaic.version = 11 : i64} {
  func.func @_col_moments_kernel(%arg0: i32, %arg1: i32, %arg2: memref<1x32xf32, #tpu.memory_space<vmem>>, %arg3: memref<2x32xf32, #tpu.memory_space<vmem>>, %arg4: memref<8x32xf32, #tpu.memory_space<vmem>>, %arg5: memref<8x32xf32, #tpu.memory_space<vmem>>, %arg6: memref<1x32xf32, #tpu.memory_space<vmem>>) attributes {dimension_semantics = [#tpu.dimension_semantics<parallel>, #tpu.dimension_semantics<arbitrary>], iteration_bounds = array<i64: 1, 1>, scalar_prefetch = 0 : i64, scratch_operands = 3 : i64, tpu.core_type = #tpu.core_type<tc>, window_params = [{transform_indices = @transform_0, window_bounds = array<i64: 1, 32>}, {transform_indices = @transform_1, window_bounds = array<i64: 2, 32>}]} {
    %c0_i32 = arith.constant 0 : i32
    %0 = arith.cmpi eq, %arg1, %c0_i32 : i32
    %1 = arith.extui %0 : i1 to i32
    %c0_i32_0 = arith.constant 0 : i32
    %2 = arith.cmpi ne, %1, %c0_i32_0 : i32
    scf.if %2 {
      %cst = arith.constant 0.000000e+00 : f32
      %9 = vector.broadcast %cst : f32 to vector<8x32xf32>
      %c0 = arith.constant 0 : index
      %c0_5 = arith.constant 0 : index
      %10 = vector.load %arg4[%c0, %c0_5] : memref<8x32xf32, #tpu.memory_space<vmem>>, vector<8x32xf32>
      tpu.vector_store %arg4[%c0, %c0_5], %9 {strides = array<i32>} : memref<8x32xf32, #tpu.memory_space<vmem>>, vector<8x32xf32>,
      %cst_6 = arith.constant 0.000000e+00 : f32
      %11 = vector.broadcast %cst_6 : f32 to vector<8x32xf32>
      %c0_7 = arith.constant 0 : index
      %c0_8 = arith.constant 0 : index
      %12 = vector.load %arg5[%c0_7, %c0_8] : memref<8x32xf32, #tpu.memory_space<vmem>>, vector<8x32xf32>
      tpu.vector_store %arg5[%c0_7, %c0_8], %11 {strides = array<i32>} : memref<8x32xf32, #tpu.memory_space<vmem>>, vector<8x32xf32>,
    } else {
    }
    %c0_i32_1 = arith.constant 0 : i32
    %3 = arith.cmpi slt, %arg1, %c0_i32_1 : i32
    %4 = arith.extui %3 : i1 to i32
    %c0_i32_2 = arith.constant 0 : i32
    %5 = arith.cmpi ne, %4, %c0_i32_2 : i32
    scf.if %5 {
      %c0_i32_5 = arith.constant 0 : i32
      %c1_i32 = arith.constant 1 : i32
      %9 = arith.muli %c0_i32_5, %c1_i32 : i32
      %10 = arith.index_cast %9 : i32 to index
      %c0 = arith.constant 0 : index
      %11 = vector.load %arg2[%10, %c0] : memref<1x32xf32, #tpu.memory_space<vmem>>, vector<1x32xf32>
      %c0_6 = arith.constant 0 : index
      %c0_7 = arith.constant 0 : index
      %12 = vector.load %arg4[%c0_6, %c0_7] : memref<8x32xf32, #tpu.memory_space<vmem>>, vector<1x32xf32>
      %cst = arith.constant dense<0.000000e+00> : vector<32xf32>
      %13 = vector.multi_reduction <add>, %11, %cst [0] : vector<1x32xf32> to vector<32xf32>
      %14 = vector.shape_cast %13 : vector<32xf32> to vector<1x32xf32>
      %15 = arith.addf %12, %14 : vector<1x32xf32>
      %c0_8 = arith.constant 0 : index
      %c0_9 = arith.constant 0 : index
      %16 = vector.load %arg4[%c0_8, %c0_9] : memref<8x32xf32, #tpu.memory_space<vmem>>, vector<1x32xf32>
      tpu.vector_store %arg4[%c0_8, %c0_9], %15 {strides = array<i32>} : memref<8x32xf32, #tpu.memory_space<vmem>>, vector<1x32xf32>,
      %c0_10 = arith.constant 0 : index
      %c0_11 = arith.constant 0 : index
      %17 = vector.load %arg5[%c0_10, %c0_11] : memref<8x32xf32, #tpu.memory_space<vmem>>, vector<1x32xf32>
      %18 = arith.mulf %11, %11 : vector<1x32xf32>
      %cst_12 = arith.constant dense<0.000000e+00> : vector<32xf32>
      %19 = vector.multi_reduction <add>, %18, %cst_12 [0] : vector<1x32xf32> to vector<32xf32>
      %20 = vector.shape_cast %19 : vector<32xf32> to vector<1x32xf32>
      %21 = arith.addf %17, %20 : vector<1x32xf32>
      %c0_13 = arith.constant 0 : index
      %c0_14 = arith.constant 0 : index
      %22 = vector.load %arg5[%c0_13, %c0_14] : memref<8x32xf32, #tpu.memory_space<vmem>>, vector<1x32xf32>
      tpu.vector_store %arg5[%c0_13, %c0_14], %21 {strides = array<i32>} : memref<8x32xf32, #tpu.memory_space<vmem>>, vector<1x32xf32>,
      %c1_i32_15 = arith.constant 1 : i32
    } else {
    }
    %c0_i32_3 = arith.constant 0 : i32
    %6 = arith.cmpi eq, %arg1, %c0_i32_3 : i32
    %7 = arith.extui %6 : i1 to i32
    %c0_i32_4 = arith.constant 0 : i32
    %8 = arith.cmpi ne, %7, %c0_i32_4 : i32
    scf.if %8 {
      %c0_i32_5 = arith.constant 0 : i32
      %c1_i32 = arith.constant 1 : i32
      %9 = arith.muli %c0_i32_5, %c1_i32 : i32
      %10 = arith.index_cast %9 : i32 to index
      %c0 = arith.constant 0 : index
      %11 = vector.load %arg2[%10, %c0] : memref<1x32xf32, #tpu.memory_space<vmem>>, vector<1x32xf32>
      %c0_6 = arith.constant 0 : index
      %c0_7 = arith.constant 0 : index
      %12 = vector.load %arg4[%c0_6, %c0_7] : memref<8x32xf32, #tpu.memory_space<vmem>>, vector<1x32xf32>
      %cst = arith.constant dense<0.000000e+00> : vector<32xf32>
      %13 = vector.multi_reduction <add>, %11, %cst [0] : vector<1x32xf32> to vector<32xf32>
      %14 = vector.shape_cast %13 : vector<32xf32> to vector<1x32xf32>
      %15 = arith.addf %12, %14 : vector<1x32xf32>
      %c0_8 = arith.constant 0 : index
      %c0_9 = arith.constant 0 : index
      %16 = vector.load %arg4[%c0_8, %c0_9] : memref<8x32xf32, #tpu.memory_space<vmem>>, vector<1x32xf32>
      tpu.vector_store %arg4[%c0_8, %c0_9], %15 {strides = array<i32>} : memref<8x32xf32, #tpu.memory_space<vmem>>, vector<1x32xf32>,
      %c0_10 = arith.constant 0 : index
      %c0_11 = arith.constant 0 : index
      %17 = vector.load %arg5[%c0_10, %c0_11] : memref<8x32xf32, #tpu.memory_space<vmem>>, vector<1x32xf32>
      %18 = arith.mulf %11, %11 : vector<1x32xf32>
      %cst_12 = arith.constant dense<0.000000e+00> : vector<32xf32>
      %19 = vector.multi_reduction <add>, %18, %cst_12 [0] : vector<1x32xf32> to vector<32xf32>
      %20 = vector.shape_cast %19 : vector<32xf32> to vector<1x32xf32>
      %21 = arith.addf %17, %20 : vector<1x32xf32>
      %c0_13 = arith.constant 0 : index
      %c0_14 = arith.constant 0 : index
      %22 = vector.load %arg5[%c0_13, %c0_14] : memref<8x32xf32, #tpu.memory_space<vmem>>, vector<1x32xf32>
      tpu.vector_store %arg5[%c0_13, %c0_14], %21 {strides = array<i32>} : memref<8x32xf32, #tpu.memory_space<vmem>>, vector<1x32xf32>,
      %c1_i32_15 = arith.constant 1 : i32
      %c0_16 = arith.constant 0 : index
      %c0_17 = arith.constant 0 : index
      %23 = vector.load %arg4[%c0_16, %c0_17] : memref<8x32xf32, #tpu.memory_space<vmem>>, vector<8x32xf32>
      %cst_18 = arith.constant dense<0.000000e+00> : vector<32xf32>
      %24 = vector.multi_reduction <add>, %23, %cst_18 [0] : vector<8x32xf32> to vector<32xf32>
      %25 = vector.shape_cast %24 : vector<32xf32> to vector<1x32xf32>
      %c0_19 = arith.constant 0 : index
      %c0_20 = arith.constant 0 : index
      %26 = vector.load %arg3[%c0_19, %c0_20] : memref<2x32xf32, #tpu.memory_space<vmem>>, vector<1x32xf32>
      tpu.vector_store %arg3[%c0_19, %c0_20], %25 {strides = array<i32>} : memref<2x32xf32, #tpu.memory_space<vmem>>, vector<1x32xf32>,
      %c0_21 = arith.constant 0 : index
      %c0_22 = arith.constant 0 : index
      %27 = vector.load %arg5[%c0_21, %c0_22] : memref<8x32xf32, #tpu.memory_space<vmem>>, vector<8x32xf32>
      %cst_23 = arith.constant dense<0.000000e+00> : vector<32xf32>
      %28 = vector.multi_reduction <add>, %27, %cst_23 [0] : vector<8x32xf32> to vector<32xf32>
      %29 = vector.shape_cast %28 : vector<32xf32> to vector<1x32xf32>
      %c1 = arith.constant 1 : index
      %c0_24 = arith.constant 0 : index
      %30 = vector.load %arg3[%c1, %c0_24] : memref<2x32xf32, #tpu.memory_space<vmem>>, vector<1x32xf32>
      tpu.vector_store %arg3[%c1, %c0_24], %29 {strides = array<i32>} : memref<2x32xf32, #tpu.memory_space<vmem>>, vector<1x32xf32>,
    } else {
    }
    return
  }
  func.func @transform_0(%arg0: i32, %arg1: i32) -> (i32, i32) {
    %c0_i32 = arith.constant 0 : i32
    return %arg1, %arg0 : i32, i32
  }
  func.func @transform_1(%arg0: i32, %arg1: i32) -> (i32, i32) {
    %c0_i32 = arith.constant 0 : i32
    %c0_i32_0 = arith.constant 0 : i32
    return %c0_i32, %arg0 : i32, i32
  }
}

</mosaic_0001>

<bundles_post_ra>
// kernel: tpu_custom_call.1
= control target key start
LH: loop header
LB: loop body
LE: loop exit
PB: predicated region body
PF: predicated region fallthrough
CT: control target
= control target key end

     0   :  { %6 = vsyncpa [#allocation6], 0  ;;  %s177_s0 = inlined_call_operand.hbm [shape: f32[1,32], index: 0, kind: input, shape index: {}]   ;;  %s178_s1 = inlined_call_operand.hbm [shape: f32[2,32], index: 1, kind: output, shape index: {}]  }
   0x1   :  { %7 = vsyncpa [#allocation7], 0  ;;  %s13_s8 = sshll.u32 %s177_s0, 4  ;;  %s150_s9 = smov [#allocation5]   ;;  %s14_s8 = int_to_ptr.hbm [resolvable:$true] %s13_s8 }
   0x2   :  { %s15_s10 = sshll.u32 %s150_s9, 4  ;;  %s16_s10 = int_to_ptr.vmem [resolvable:$true] %s15_s10 }
   0x3   :  { %18 = dma.hbm_to_vmem [thread:$0]  %s14_s8, 16, %s16_s10, [#allocation6]  }
   0x4   :  { %146 = dma.done.wait [#allocation6], 16  }
   0x5   :  { %147 = vsyncadd [#allocation6], 4294967280  ;;  %vm27_vm0 = vcmask 261120   ;;  %v151_v0 = vmov 0.0   ;;  %v48_v1 = vld [vmem:[#allocation5] sm:$0x1] }
   0x6   :  { %28 = vst.msk [vmem:[#allocation2] sm:$0xff] %vm27_vm0, %v151_v0  ;;  %vm52_vm1 = vcmask 253952   ;;  %v55_v3 = vmul.f32 %v48_v1, %v48_v1  ;;  %s152_s0 = smov [#allocation8]   ;;  %s85_s14 = sshll.u32 %s178_s1, 4  ;;  %s86_s14 = int_to_ptr.hbm [resolvable:$true] %s85_s14 }
   0x7   :  { %29 = vst.msk [vmem:[#allocation3] sm:$0xff] %vm27_vm0, %v151_v0  ;;  %s83_s11 = sshll.u32 %s152_s0, 4  ;;  %s84_s11 = int_to_ptr.vmem [resolvable:$true] %s83_s11 }
   0xd   :  { %v49_v2 = vld [vmem:[#allocation2] sm:$0x1] }
   0xe   :  { %v51_v4 = vadd.f32 %v49_v2, %v48_v1  ;;  %v54_v5 = vld [vmem:[#allocation3] sm:$0x1] }
   0xf   :  { %v57_v6 = vadd.f32 %v55_v3, %v54_v5 }
  0x10   :  { %53 = vst.msk [vmem:[#allocation2] sm:$0x1] %vm52_vm1, %v51_v4 }
  0x11   :  { %58 = vst.msk [vmem:[#allocation3] sm:$0x1] %vm52_vm1, %v57_v6 }
  0x17   :  { %v59_v7 = vld [vmem:[#allocation2] sm:$0xff] }
  0x18   :  { %v61_v8 = vsel %vm27_vm0, %v59_v7, 0.0  ;;  %v69_v9 = vld [vmem:[#allocation3] sm:$0xff] }
  0x19   :  { %v62_v10 = vrot.slane %v61_v8, 4  ;;  %v70_v11 = vsel %vm27_vm0, %v69_v9, 0.0 }
  0x1a   :  { %v71_v12 = vrot.slane %v70_v11, 4 }
  0x1b   :  { %v63_v13 = vadd.f32 %v62_v10, %v61_v8 }
  0x1c   :  { %v72_v14 = vadd.f32 %v71_v12, %v70_v11 }
  0x1d   :  { %v64_v15 = vrot.slane %v63_v13, 2 }
  0x1e   :  { %v73_v16 = vrot.slane %v72_v14, 2 }
  0x1f   :  { %v65_v17 = vadd.f32 %v64_v15, %v63_v13 }
  0x20   :  { %v74_v18 = vadd.f32 %v73_v16, %v72_v14 }
  0x21   :  { %v66_v19 = vrot.slane %v65_v17, 1 }
  0x22   :  { %v75_v20 = vrot.slane %v74_v18, 1 }
  0x23   :  { %v67_v21 = vadd.f32 %v66_v19, %v65_v17 }
  0x24   :  { %v76_v22 = vadd.f32 %v75_v20, %v74_v18 }
  0x25   :  { %68 = vst.msk [vmem:[#allocation8] sm:$0x1] %vm52_vm1, %v67_v21 }
  0x26   :  { %77 = vst.msk [vmem:[#allocation8 + $0x1] sm:$0x1] %vm52_vm1, %v76_v22 }
  0x27   :  { %88 = dma.vmem_to_hbm [thread:$0]  %s84_s11, 32, %s86_s14, [#allocation7]  }
  0x28   :  { %148 = dma.done.wait [#allocation7], 32  }
  0x29   :  { %149 = vsyncadd [#allocation7], 4294967264 }
  0x2a   :  { %93 = vsyncpa [#allocation6], 1 }
  0x2b   :  { %94 = vsyncpa [#allocation7], 1 }

</bundles_post_ra>
